<compile_context>
chip_gen: v6e
topology: v6e:2x2x1
jax: 0.10.0
libtpu: 0.0.40
codegen_flags: <defaults>
</compile_context>

<pallas_src>
import functools

import numpy as np
import jax
import jax.numpy as jnp
from jax.experimental import pallas as pl
from jax.experimental.pallas import tpu as pltpu


def _conv_gauss_pool_kernel(patches_ref, w_ref, pt_ref, out_ref, *, b_tile, m):
    # Conv2d(stride=1, padding=0, bias folded into row K of w/patches):
    #   (Co, Kp) bf16 @ (Kp, B_TILE*M) bf16 -> f32 on the MXU.
    conv = jnp.dot(w_ref[...], patches_ref[0],
                   preferred_element_type=jnp.float32)
    # GNCNN Gaussian activation, kept in f32.
    # TODO(synk): `self.gaussian` is undefined in the provided module snippet;
    # the standard GNCNN form exp(-x^2) (sigma = 1) is used here.
    g = jnp.exp(-(conv * conv))
    # AvgPool2d as a channel-major matmul with precomputed 1/9 taps.
    # TODO(synk): for large images rewrite the pool as 9 shifted adds — the
    # dense (M, Hp*Wp) pool operand scales O(H^4); fine at GNCNN block sizes.
    outs = []
    for b in range(b_tile):
        gb = g[:, b * m:(b + 1) * m]
        outs.append(jnp.dot(gb, pt_ref[...],
                            preferred_element_type=jnp.float32))
    out_ref[0] = outs[0] if b_tile == 1 else jnp.concatenate(outs, axis=-1)


def conv_gaussian_pool(x, weight, bias, *, kernel_size, pool_padding):
    """x: (N, C, H, W) f32 (PyTorch NCHW). Returns (N, Co, Hp, Wp) f32."""
    N, C, H, W = x.shape
    Co = weight.shape[0]                       # 16 for this module
    kh = kw = kernel_size
    Ho, Wo = H - kh + 1, W - kw + 1
    pp = pool_padding
    Hp = (Ho + 2 * pp - 3) // 2 + 1
    Wp = (Wo + 2 * pp - 3) // 2 + 1
    M, HpWp = Ho * Wo, Hp * Wp
    K = C * kh * kw
    Kp = ((K + 1 + 127) // 128) * 128          # +1 bias row, pad to 128 mult.

    # Batch tiling: fold images per grid step (amortize per-step overhead),
    # keep >=2 parallel steps when N > 1 (v7x megacore), cap block by VMEM.
    bytes_per_img = Kp * M * 2                 # bf16 patches per image
    b_cap = max(1, (4 * 1024 * 1024) // bytes_per_img)
    b_tile = 1 if N == 1 else min(-(-N // 2), b_cap)
    G = -(-N // b_tile)
    Npad = G * b_tile
    if Npad > N:
        x = jnp.concatenate(
            [x, jnp.zeros((Npad - N, C, H, W), x.dtype)], axis=0)

    # ---- glue: im2col, K order (c, dy, dx) matching the OIHW weight flatten.
    # TODO(synk): for large images move the im2col inside the kernel (shifted
    # slices of a VMEM-resident (C, H, W) tile) to avoid kh*kw HBM inflation.
    slices = [x[:, :, dy:dy + Ho, dx:dx + Wo]
              for dy in range(kh) for dx in range(kw)]        # (Npad,C,Ho,Wo)
    pat = jnp.stack(slices, axis=2).reshape(Npad, K, M)       # (Npad, K, M)
    pat = (pat.reshape(G, b_tile, K, M)
              .transpose(0, 2, 1, 3)
              .reshape(G, K, b_tile * M))                     # channel-major
    patches = jnp.concatenate(
        [pat,
         jnp.ones((G, 1, b_tile * M), pat.dtype),             # bias row
         jnp.zeros((G, Kp - K - 1, b_tile * M), pat.dtype)],
        axis=1).astype(jnp.bfloat16)                          # (G, Kp, Bt*M)

    # Conv weight (Co, Kp) with the bias folded in at column K.
    w_all = jnp.concatenate(
        [weight.reshape(Co, K).astype(jnp.float32),
         bias.reshape(Co, 1).astype(jnp.float32),
         jnp.zeros((Co, Kp - K - 1), jnp.float32)],
        axis=1).astype(jnp.bfloat16)

    # Transposed pooling matrix (M, Hp*Wp): constant 1/9 taps
    # (count_include_pad=True), zero padding folded in.
    Pt = np.zeros((M, HpWp), np.float32)
    for i in range(Hp):
        for j in range(Wp):
            for ky in range(3):
                for kx in range(3):
                    h = 2 * i + ky - pp
                    w = 2 * j + kx - pp
                    if 0 <= h < Ho and 0 <= w < Wo:
                        Pt[h * Wo + w, i * Wp + j] += 1.0 / 9.0
    Pt = jnp.asarray(Pt)

    kernel = functools.partial(_conv_gauss_pool_kernel, b_tile=b_tile, m=M)
    out = pl.pallas_call(
        kernel,
        out_shape=jax.ShapeDtypeStruct((G, Co, b_tile * HpWp), jnp.float32),
        grid_spec=pltpu.PrefetchScalarGridSpec(
            num_scalar_prefetch=0,
            grid=(G,),
            in_specs=[
                pl.BlockSpec((1, Kp, b_tile * M), lambda g: (g, 0, 0)),  # patches
                pl.BlockSpec((Co, Kp), lambda g: (0, 0)),                # weight+bias
                pl.BlockSpec((M, HpWp), lambda g: (0, 0)),               # pool taps
            ],
            out_specs=pl.BlockSpec((1, Co, b_tile * HpWp),
                                   lambda g: (g, 0, 0)),
        ),
        compiler_params=pltpu.CompilerParams(
            dimension_semantics=("parallel",)),
    )(patches, w_all, Pt)

    # back to PyTorch NCHW
    out = (out.reshape(G, Co, b_tile, Hp, Wp)
              .transpose(0, 2, 1, 3, 4)
              .reshape(Npad, Co, Hp, Wp))
    return out[:N]


def _reference(x, weight, bias, pool_padding):
    """Pure-JAX f32 reference mirroring the PyTorch module semantics."""
    conv = jax.lax.conv_general_dilated(
        x, weight, window_strides=(1, 1), padding='VALID',
        dimension_numbers=('NCHW', 'OIHW', 'NCHW'))
    conv = conv + bias[None, :, None, None]
    g = jnp.exp(-(conv * conv))
    pp = pool_padding
    gp = jnp.pad(g, ((0, 0), (0, 0), (pp, pp), (pp, pp)))
    pooled = jax.lax.reduce_window(
        gp, 0.0, jax.lax.add, (1, 1, 3, 3), (1, 1, 2, 2), 'VALID') / 9.0
    return pooled


if __name__ == "__main__":
    # Shapes consistent with the module: Conv2d(in=4 -> out=16, k=5),
    # AvgPool2d(3, stride=2, padding=1).
    N, C, H, W = 2, 4, 16, 16
    kernel_size = 5
    pool_padding = 1

    key = jax.random.PRNGKey(0)
    kx, kw_, kb = jax.random.split(key, 3)
    x = jax.random.normal(kx, (N, C, H, W), dtype=jnp.float32)
    bound = 1.0 / np.sqrt(C * kernel_size * kernel_size)
    weight = jax.random.uniform(kw_, (16, C, kernel_size, kernel_size),
                                minval=-bound, maxval=bound, dtype=jnp.float32)
    bias = jax.random.uniform(kb, (16,), minval=-bound, maxval=bound,
                              dtype=jnp.float32)

    out = conv_gaussian_pool(x, weight, bias,
                             kernel_size=kernel_size,
                             pool_padding=pool_padding)
    out = jax.block_until_ready(out)

    ref = jax.block_until_ready(_reference(x, weight, bias, pool_padding))
    # Tolerance accounts for bf16 MXU inputs (f32 accumulation) vs. the
    # all-f32 reference; observed error is ~1e-3.
    np.testing.assert_allclose(np.asarray(out), np.asarray(ref),
                               rtol=2e-2, atol=2e-2)

    print("KERNEL_OK")
</pallas_src>

<mosaic_0001>
module attributes {stable_mosaic.version = 11 : i64} {
  func.func @_conv_gauss_pool_kernel(%arg0: i32, %arg1: memref<1x128x144xbf16, #tpu.memory_space<vmem>>, %arg2: memref<16x128xbf16, #tpu.memory_space<vmem>>, %arg3: memref<144x36xf32, #tpu.memory_space<vmem>>, %arg4: memref<1x16x36xf32, #tpu.memory_space<vmem>>) attributes {dimension_semantics = [#tpu.dimension_semantics<parallel>], iteration_bounds = array<i64: 2>, scalar_prefetch = 0 : i64, scratch_operands = 0 : i64, tpu.core_type = #tpu.core_type<tc>, window_params = [{transform_indices = @transform_0, window_bounds = array<i64: 1, 128, 144>}, {pipeline_mode = #tpu.pipeline_mode<synchronous>, transform_indices = @transform_1, window_bounds = array<i64: 16, 128>}, {pipeline_mode = #tpu.pipeline_mode<synchronous>, transform_indices = @transform_2, window_bounds = array<i64: 144, 36>}, {transform_indices = @transform_3, window_bounds = array<i64: 1, 16, 36>}]} {
    %c0 = arith.constant 0 : index
    %c0_0 = arith.constant 0 : index
    %0 = vector.load %arg2[%c0, %c0_0] : memref<16x128xbf16, #tpu.memory_space<vmem>>, vector<16x128xbf16>
    %c0_1 = arith.constant 0 : index
    %c0_2 = arith.constant 0 : index
    %c0_3 = arith.constant 0 : index
    %1 = vector.load %arg1[%c0_1, %c0_2, %c0_3] : memref<1x128x144xbf16, #tpu.memory_space<vmem>>, vector<1x128x144xbf16>
    %2 = vector.shape_cast %1 : vector<1x128x144xbf16> to vector<128x144xbf16>
    %cst = arith.constant dense<0.000000e+00> : vector<16x144xf32>
    %3 = tpu.matmul %0, %2, %cst {dimension_numbers = #tpu.dot_dimension_numbers<[1], [0], [0], [1], [0, 0, 1, 1], [], []>} : vector<16x128xbf16>, vector<128x144xbf16>, vector<16x144xf32> -> vector<16x144xf32>
    %4 = arith.mulf %3, %3 : vector<16x144xf32>
    %cst_4 = arith.constant 0.000000e+00 : f32
    %5 = vector.broadcast %cst_4 : f32 to vector<16x144xf32>
    %6 = arith.subf %5, %4 : vector<16x144xf32>
    %7 = math.exp %6 : vector<16x144xf32>
    %c0_5 = arith.constant 0 : index
    %c0_6 = arith.constant 0 : index
    %8 = vector.load %arg3[%c0_5, %c0_6] : memref<144x36xf32, #tpu.memory_space<vmem>>, vector<144x36xf32>
    %cst_7 = arith.constant dense<0.000000e+00> : vector<16x36xf32>
    %9 = tpu.matmul %7, %8, %cst_7 {dimension_numbers = #tpu.dot_dimension_numbers<[1], [0], [0], [1], [0, 0, 1, 1], [], []>} : vector<16x144xf32>, vector<144x36xf32>, vector<16x36xf32> -> vector<16x36xf32>
    %c0_8 = arith.constant 0 : index
    %c0_9 = arith.constant 0 : index
    %c0_10 = arith.constant 0 : index
    %10 = vector.load %arg4[%c0_8, %c0_9, %c0_10] : memref<1x16x36xf32, #tpu.memory_space<vmem>>, vector<1x16x36xf32>
    %11 = vector.shape_cast %10 : vector<1x16x36xf32> to vector<16x36xf32>
    %12 = vector.shape_cast %9 : vector<16x36xf32> to vector<1x16x36xf32>
    tpu.vector_store %arg4[%c0_8, %c0_9, %c0_10], %12 {strides = array<i32>} : memref<1x16x36xf32, #tpu.memory_space<vmem>>, vector<1x16x36xf32>,
    return
  }
  func.func @transform_0(%arg0: i32) -> (i32, i32, i32) {
    %c0_i32 = arith.constant 0 : i32
    %c0_i32_0 = arith.constant 0 : i32
    %c0_i32_1 = arith.constant 0 : i32
    return %arg0, %c0_i32, %c0_i32_0 : i32, i32, i32
  }
  func.func @transform_1(%arg0: i32) -> (i32, i32) {
    %c0_i32 = arith.constant 0 : i32
    %c0_i32_0 = arith.constant 0 : i32
    %c0_i32_1 = arith.constant 0 : i32
    return %c0_i32, %c0_i32_0 : i32, i32
  }
  func.func @transform_2(%arg0: i32) -> (i32, i32) {
    %c0_i32 = arith.constant 0 : i32
    %c0_i32_0 = arith.constant 0 : i32
    %c0_i32_1 = arith.constant 0 : i32
    return %c0_i32, %c0_i32_0 : i32, i32
  }
  func.func @transform_3(%arg0: i32) -> (i32, i32, i32) {
    %c0_i32 = arith.constant 0 : i32
    %c0_i32_0 = arith.constant 0 : i32
    %c0_i32_1 = arith.constant 0 : i32
    return %arg0, %c0_i32, %c0_i32_0 : i32, i32, i32
  }
}

</mosaic_0001>

<bundles_post_ra>
// kernel: tpu_custom_call.1
= control target key start
LH: loop header
LB: loop body
LE: loop exit
PB: predicated region body
PF: predicated region fallthrough
CT: control target
= control target key end

     0   :  { %8 = vsyncpa [#allocation3], 0  ;;  %s903_s0 = inlined_call_operand.vmem [shape: bf16[2,128,144], index: 0, kind: input, shape index: {}]   ;;  %s904_s1 = inlined_call_operand.vmem [shape: bf16[16,128], index: 1, kind: input, shape index: {}]   ;;  %s905_s2 = inlined_call_operand.vmem [shape: f32[144,36], index: 2, kind: input, shape index: {}]   ;;  %s906_s3 = inlined_call_operand.hbm [shape: f32[2,16,36], index: 3, kind: output, shape index: {}]  }
   0x1   :  { %10 = vsyncpa [#allocation3 + $0x1], 0  ;;  %s708_s12 = smov 0   ;;  %s710_s13 = smov 0  }
   0x2   :  { %s712_s14 = smov 0   ;;  %s714_s15 = smov 0  }
   0x3 LB: > { %s729_s16 = sadd.s32 4294967295, %s681_s15   ;;  %s512_s17 = sadd.s32 4294967294, %s681_s15   ;;  %s681_s15 = sphi %s714_s15, %s912_s15   ;;  %s677_s14 = sphi %s712_s14, %s911_s14   ;;  %s673_s13 = sphi %s710_s13, %s910_s13   ;;  %s669_s12 = sphi %s708_s12, %s909_s12  }
   0x4   : > { %s733_s18 = sadd.s32 1, %s681_s15   ;;  %s91_s19 = sadd.s32 1, %s677_s14 }
   0x5   : > { %s88_s20 = ssub.s32 %s681_s15, %s733_s18  ;;  %p101_p0 = scmp.ne.s32.totalorder %s677_s14, %s673_s13 }
   0x6   : > { %p89_p1 = scmp.eq.s32.totalorder %s88_s20, 0  ;;  %p102_p2 = scmp.eq.s32.totalorder %s729_s16, 1 }
   0x7   : > { %p107_p3 = scmp.ne.s32.totalorder %s673_s13, %s669_s12  ;;  %p108_p4 = scmp.eq.s32.totalorder %s512_s17, 1 }
   0x8   : > { %s744_s21 = scalar_select %p89_p1, %s677_s14, %s91_s19  }
   0x9   : > { %p746_p5 = por %p102_p2, %p101_p0  ;;  %p750_p6 = por %p108_p4, %p107_p3 }
   0xa   : > { %p515_p7 = scmp.ge.s32.totalorder %s681_s15, 1  ;;  %p140_p8 = scmp.lt.s32.totalorder %s681_s15, 3 }
   0xc   : > { %p141_p9 = pnand %p515_p7, %p140_p8 }
   0xd   : > { %p164_p10 = scmp.lt.s32.totalorder (!%p141_p9), %s729_s16, 1  ;;  %s161_s4 = sand.u32 (!%p141_p9), 1, %s673_s13  }
   0xe   : > { %144 = sbr.rel (%p141_p9) target bundleno = 484 (0x1e4), region = 32  ;;  %s516_s5 = sshll.u32 (!%p141_p9), %s161_s4, 4 }
   0xf   : > { %s163_s6 = scalar_lea.vmem (!%p141_p9), [#allocation2], %s516_s5  ;;  %s544_s8 = sshll.u32 (!%p141_p9), %s729_s16, 8 }
  0x10   : > { %s861_s11 = scalar_lea.hbm (!%p141_p9), %s906_s3, %s544_s8  ;;  %s863_s17 = scalar_lea.sflag (!%p141_p9), [#allocation3], %s161_s4 }
  0x13   : > { %v683_v0 = vmov 0   ;;  %v348_v1 = vld [vmem:[%s905_s2 + $0x78] sm:$0xff]  ;;  %s165_s26 = scalar_select %p164_p10, %s729_s16, 1  ;;  %v684_v2 = vmov 0.0   ;;  %v347_v3 = vld [vmem:[%s905_s2 + $0x70] sm:$0xff]  ;;  %v346_v4 = vld [vmem:[%s905_s2 + $0x68] sm:$0xff] }
  0x14   : > { %306 = vmatprep.mubr.bf16.mxu0 %v683_v0  ;;  %358 = vmatprep.subr.mxu1 %v684_v2  ;;  %v345_v5 = vld [vmem:[%s905_s2 + $0x60] sm:$0xff]  ;;  %v344_v9 = vld [vmem:[%s905_s2 + $0x58] sm:$0xff]  ;;  %v343_v11 = vld [vmem:[%s905_s2 + $0x50] sm:$0xff]  ;;  %vm351_vm0 = vcmask 130048   ;;  %vm433_vm1 = vcmask 293888   ;;  %s685_s16 = smov [#allocation2]  }
  0x15   : > { %359 = vmatpush1.msra.mxu1 %v348_v1  ;;  %s543_s29 = sshll.u32 %s165_s26, 7  ;;  %v612_v24 = vld [vmem:[%s904_s1] sm:$0xff]   ;;  %v342_v25 = vld [vmem:[%s905_s2 + $0x48] sm:$0xff]  ;;  %v340_v27 = vld [vmem:[%s905_s2 + $0x38] sm:$0xff]  ;;  %s625_s20 = sshll.u32 %s685_s16, 4  ;;  %s626_s20 = int_to_ptr.vmem [resolvable:$false] %s625_s20 }
  0x16   : > { %360 = vmatprep.subr.mxu1 %v684_v2  ;;  %s772_s7 = scalar_lea.vmem %s903_s0, %s543_s29  ;;  %v341_v26 = vld [vmem:[%s905_s2 + $0x40] sm:$0xff]  ;;  %v339_v28 = vld [vmem:[%s905_s2 + $0x30] sm:$0xff]  ;;  %v338_v29 = vld [vmem:[%s905_s2 + $0x28] sm:$0xff]  ;;  %s627_s24 = scalar_lea.vmem %s626_s20, 512 }
  0x17   : > { %361 = vmatpush1.msra.mxu1 %v347_v3  ;;  %v588_v6 = vld [vmem:[%s772_s7 + $0x74] ss:$8 sps:$4 sm:$0xff]   ;;  %v590_v7 = vld [vmem:[%s772_s7 + $0x70] ss:$8 sps:$4 sm:$0xff]   ;;  %v591_v8 = vld [vmem:[%s772_s7 + $0x64] ss:$8 sps:$4 sm:$0xff]  }
  0x18   : > { %362 = vmatprep.subr.mxu1 %v684_v2  ;;  %274 = vmatprep.subr.bf16.mxu0 %v588_v6  ;;  %v593_v10 = vld [vmem:[%s772_s7 + $0x60] ss:$8 sps:$4 sm:$0xff]   ;;  %v594_v12 = vld [vmem:[%s772_s7 + $0x54] ss:$8 sps:$4 sm:$0xff]   ;;  %v596_v13 = vld [vmem:[%s772_s7 + $0x50] ss:$8 sps:$4 sm:$0xff]  }
  0x19   : > { %363 = vmatpush1.msra.mxu1 %v346_v4  ;;  %275 = vmatpush1.bf16.msra.mxu0 %v590_v7  ;;  %v597_v14 = vld [vmem:[%s772_s7 + $0x44] ss:$8 sps:$4 sm:$0xff]   ;;  %v599_v15 = vld [vmem:[%s772_s7 + $0x40] ss:$8 sps:$4 sm:$0xff]   ;;  %v600_v16 = vld [vmem:[%s772_s7 + $0x34] ss:$8 sps:$4 sm:$0xff]  }
  0x1a   : > { %364 = vmatprep.subr.mxu1 %v684_v2  ;;  %276 = vmatprep.subr.bf16.mxu0 %v591_v8  ;;  %v602_v17 = vld [vmem:[%s772_s7 + $0x30] ss:$8 sps:$4 sm:$0xff]   ;;  %v603_v18 = vld [vmem:[%s772_s7 + $0x24] ss:$8 sps:$4 sm:$0xff]   ;;  %v605_v19 = vld [vmem:[%s772_s7 + $0x20] ss:$8 sps:$4 sm:$0xff]  }
  0x1b   : > { %365 = vmatpush1.msra.mxu1 %v345_v5  ;;  %v606_v20 = vld [vmem:[%s772_s7 + $0x14] ss:$8 sps:$4 sm:$0xff]   ;;  %v608_v21 = vld [vmem:[%s772_s7 + $0x10] ss:$8 sps:$4 sm:$0xff]   ;;  %v609_v22 = vld [vmem:[%s772_s7 + $0x4] ss:$8 sps:$4 sm:$0xff]  }
  0x1c   : > { %366 = vmatprep.subr.mxu1 %v684_v2  ;;  %v611_v23 = vld [vmem:[%s772_s7] ss:$8 sps:$4 sm:$0xff]   ;;  %v336_v31 = vld [vmem:[%s905_s2 + $0x18] sm:$0xff]  ;;  %v335_v32 = vld [vmem:[%s905_s2 + $0x10] sm:$0xff]  ;;  %s450_s7 = sshll.u32 %s163_s6, 4  ;;  %s856_s7 = int_to_ptr.vmem [resolvable:$true] %s450_s7 }
  0x1d   : > { %367 = vmatpush1.msra.mxu1 %v344_v9  ;;  %277 = vmatpush1.bf16.msra.mxu0 %v593_v10  ;;  %v337_v30 = vld [vmem:[%s905_s2 + $0x20] sm:$0xff]  ;;  %v334_v33 = vld [vmem:[%s905_s2 + $0x8] sm:$0xff]  ;;  %s621_s19 = scalar_lea.vmem %s856_s7, 256  ;;  %p628_p0 = scmp.lt.s32.totalorder %s856_s7, %s626_s20 }
  0x1e   : > { %368 = vmatprep.subr.mxu1 %v684_v2  ;;  %278 = vmatprep.subr.bf16.mxu0 %v594_v12  ;;  %v333_v34 = vld [vmem:[%s905_s2] sm:$0xff]  ;;  %v350_v35 = vld [vmem:[%s905_s2 + $0x88] sm:$0xff]  ;;  %p622_p11 = scmp.ne.s32.totalorder %s856_s7, %s621_s19  ;;  %p629_p1 = scmp.lt.s32.totalorder %s627_s24, %s621_s19 }
  0x1f   : > { %369 = vmatpush1.msra.mxu1 %v343_v11  ;;  %v349_v36 = vld [vmem:[%s905_s2 + $0x80] sm:$0xff] }
  0x20   : > { %370 = vmatprep.subr.mxu1 %v684_v2  ;;  %p623_p12 = pnand %p622_p11, %p746_p5  ;;  %p630_p2 = por %p629_p1, %p628_p0 }
  0x21   : > { %279 = vmatpush1.bf16.msra.mxu0 %v596_v13  ;;  %371 = vmatpush1.msra.mxu1 %v342_v25 }
  0x22   : > { %280 = vmatprep.subr.bf16.mxu0 %v597_v14  ;;  %372 = vmatprep.subr.mxu1 %v684_v2  ;;  %p624_p13 = pneg %p623_p12 }
  0x23   : > { %373 = vmatpush1.msra.mxu1 %v341_v26 }
  0x24   : > { %374 = vmatprep.subr.mxu1 %v684_v2  ;;  %p631_p3 = pnand %p630_p2, %p624_p13 }
  0x25   : > { %281 = vmatpush1.bf16.msra.mxu0 %v599_v15  ;;  %375 = vmatpush1.msra.mxu1 %v340_v27 }
  0x26   : > { %282 = vmatprep.subr.bf16.mxu0 %v600_v16  ;;  %376 = vmatprep.subr.mxu1 %v684_v2 }
  0x27   : > { %377 = vmatpush1.msra.mxu1 %v339_v28 }
  0x28   : > { %378 = vmatprep.subr.mxu1 %v684_v2 }
  0x29   : > { %283 = vmatpush1.bf16.msra.mxu0 %v602_v17  ;;  %379 = vmatpush1.msra.mxu1 %v338_v29 }
  0x2a   : > { %284 = vmatprep.subr.bf16.mxu0 %v603_v18  ;;  %380 = vmatprep.subr.mxu1 %v684_v2 }
  0x2b   : > { %381 = vmatpush1.msra.mxu1 %v337_v30 }
  0x2c   : > { %382 = vmatprep.subr.mxu1 %v684_v2 }
  0x2d   : > { %285 = vmatpush1.bf16.msra.mxu0 %v605_v19  ;;  %383 = vmatpush1.msra.mxu1 %v336_v31 }
  0x2e   : > { %286 = vmatprep.subr.bf16.mxu0 %v606_v20  ;;  %384 = vmatprep.subr.mxu1 %v684_v2 }
  0x2f   : > { %385 = vmatpush1.msra.mxu1 %v335_v32 }
  0x30   : > { %386 = vmatprep.subr.mxu1 %v684_v2 }
  0x31   : > { %287 = vmatpush1.bf16.msra.mxu0 %v608_v21  ;;  %387 = vmatpush1.msra.mxu1 %v334_v33 }
  0x32   : > { %288 = vmatprep.subr.bf16.mxu0 %v609_v22  ;;  %388 = vmatprep.subr.mxu1 %v684_v2 }
  0x33   : > { %389 = vmatpush1.msra.mxu1 %v333_v34 }
  0x34   : > { %418 = vmatprep.subr.mxu1 %v684_v2 }
  0x35   : > { %289 = vmatpush1.bf16.msra.mxu0 %v611_v23  ;;  %419 = vmatpush2.msra.mxu1 %v350_v35 }
  0x36   : > { %420 = vmatprep.subr.mxu1 %v684_v2 }
  0x37   : > { %421 = vmatpush2.msra.mxu1 %v349_v36 }
  0x38   : > { %307 = vmatmul.mubr.bf16.vlgmr.msra.gmra.mxu0 %v612_v24 }
  0xf8   : > { %v308_v37 = vpop.f32.mrf.mxu0 }
  0xf9   : > { %v317_v38 = vmul.f32 %v308_v37, %v308_v37 }
  0xfa   : > { %v310_v39 = vpop.f32.mrf.mxu0 }
  0xfb   : > { %v321_v40 = vsub.f32 0.0, %v317_v38  ;;  %v318_v41 = vmul.f32 %v310_v39, %v310_v39 }
  0xfc   : > { %v312_v42 = vpop.f32.mrf.mxu0 }
  0xfd   : > { %v322_v43 = vsub.f32 0.0, %v318_v41  ;;  %v319_v44 = vmul.f32 %v312_v42, %v312_v42  ;;  %v325_v45 = vmul.f32 1.442695, %v321_v40 }
  0xfe   : > { %v314_v46 = vpop.f32.mrf.mxu0 }
  0xff   : > { %v327_v47 = vmul.f32 1.442695, %v322_v43  ;;  %v323_v48 = vsub.f32 0.0, %v319_v44  ;;  %v320_v49 = vmul.f32 %v314_v46, %v314_v46 }
 0x101   : > { %613 = vpow2.f32 %v327_v47  ;;  %v324_v50 = vsub.f32 0.0, %v320_v49  ;;  %v329_v51 = vmul.f32 1.442695, %v323_v48 }
 0x102   : > { %615 = vpow2.f32 %v325_v45 }
 0x103   : > { %v331_v52 = vmul.f32 1.442695, %v324_v50 }
 0x105   : > { %617 = vpow2.f32 %v331_v52 }
 0x106   : > { %619 = vpow2.f32 %v329_v51 }
 0x10e   : > { %v614_v53 = vpop.eup %613 }
 0x10f   : > { %v616_v54 = vpop.eup %615  ;;  %536 = vmatprep.mubr.msk.f32.mxu1 %vm351_vm0, %v614_v53 }
 0x110   : > { %423 = vmatmul.mubr.f32.vlgmr.msra.gmra.mxu1 %v616_v54 }
 0x112   : > { %v618_v55 = vpop.eup %617 }
 0x113   : > { %v620_v56 = vpop.eup %619  ;;  %537 = vmatprep.mubr.msk.f32.mxu1 %vm351_vm0, %v618_v55 }
 0x114   : > { %428 = vmatmul.mubr.f32.gmra.mxu1 %v620_v56 }
 0x1d0   : > { %v424_v57 = vpop.f32.mrf.mxu1 }
 0x1d1   : > { %434 = vst.msk [vmem:[%s163_s6] sm:$0xff] %vm433_vm1, %v424_v57 }
 0x1d2   : > { %v426_v58 = vpop.f32.mrf.mxu1 }
 0x1d4   : > { %v429_v59 = vpop.f32.mrf.mxu1 }
 0x1d5   : > { %435 = vst.msk [vmem:[%s163_s6 + $0x8] sm:$0xff] %vm433_vm1, %v429_v59 }
 0x1d6   : > { %v431_v60 = vpop.f32.mrf.mxu1 }
 0x1d7   : > { %634 = shalt.err (!%p631_p3)
}
 0x1d8   : > { %s635_s25 = scalar_lea.hbm %s861_s11, 256  ;;  %s639_s28 = scalar_lea.hbm %s906_s3, 512 }
 0x1d9   : > { %p636_p4 = scmp.ne.s32.totalorder %s861_s11, %s635_s25  ;;  %p640_p9 = scmp.lt.s32.totalorder %s861_s11, %s906_s3 }
 0x1da   : > { %p641_p10 = scmp.lt.s32.totalorder %s639_s28, %s635_s25 }
 0x1db   : > { %p637_p7 = pnand %p636_p4, %p746_p5 }
 0x1dc   : > { %p642_p11 = por %p641_p10, %p640_p9 }
 0x1dd   : > { %p638_p8 = pneg %p637_p7 }
 0x1df   : > { %p643_p12 = pnand %p642_p11, %p638_p8 }
 0x1e1   : > { %646 = shalt.err (!%p643_p12)
}
 0x1e2   : > { %s686_s4 = smov 128   ;;  %s687_s5 = smov 8  }
 0x1e3   : > { %545 = dma.vmem_to_hbm [thread:$0]  (%p746_p5), %s856_s7, 256, %s861_s11, %s863_s17, %s686_s4, %s686_s4, %s687_s5  }
 0x1e4 PF: > { %p551_p13 = scmp.ge.s32.totalorder %s681_s15, 2  ;;  %s465_s6 = sand.u32 1, %s669_s12  }
 0x1e5   : > { %s466_s8 = scalar_lea.sflag [#allocation3], %s465_s6 }
 0x1e6   : > { %p548_p0 = pnand %p551_p13, %p750_p6 }
 0x1e8   : > { %p549_p1 = pneg %p548_p0 }
 0x1ea   : > { %664 = dma.done.wait (%p549_p1), %s466_s8, 256  }
 0x1eb   : > { %666 = vsyncadd (%p549_p1), %s466_s8, 4294967040  ;;  %p13_p2 = scmp.ge.s32.totalorder %s733_s18, 4   ;;  %s909_s12 = smov %s673_s13 }
 0x1ec   : > { %s910_s13 = smov %s677_s14  ;;  %s911_s14 = smov %s744_s21 }
 0x1ed   : > { %s912_s15 = smov %s733_s18  ;;  %15 = sbr.rel (!%p13_p2) target bundleno = 3 (0x3), region = 67 }
 0x1f2   :  { %471 = vsyncpa [#allocation3], 1 }
 0x1f3   :  { %473 = vsyncpa [#allocation3 + $0x1], 1 }

</bundles_post_ra>
